<compile_context>
chip_gen: v7x
topology: tpu7x:2x2x1
jax: 0.10.0
libtpu: 0.0.40
codegen_flags: <defaults>
</compile_context>

<pallas_src>
import numpy as np
import jax
import jax.numpy as jnp
from jax.experimental import pallas as pl
from jax.experimental.pallas import tpu as pltpu

# ---------------- config (3-channel RGB images) ------------------------------
NOISE_VAR = 30.0
NOISE_STD = float(np.sqrt(NOISE_VAR))
IMAGENET_MEAN = np.array([0.485, 0.456, 0.406], dtype=np.float32)
IMAGENET_STD = np.array([0.229, 0.224, 0.225], dtype=np.float32)

# params lane layout (per image b, replicated over channel c so every use is a
# cheap lane-only keepdims broadcast inside the kernel):
#   [flag, h0, h1, w0, w1, erase_val, scale_c, bias_c]
_P_FLAG, _P_H0, _P_H1, _P_W0, _P_W1, _P_VAL, _P_SCALE, _P_BIAS = range(8)


def preprocess_kernel(x_ref, noise_ref, coords_ref, p_ref, out_ref):
    x = x_ref[...].astype(jnp.float32)        # (bb, C, HW) raw pixels 0..255
    p = p_ref[...]                            # (bb, C, 8)  per-image params

    flag = p[:, :, _P_FLAG:_P_FLAG + 1]       # (bb, C, 1), 0.0 / 1.0
    h0 = p[:, :, _P_H0:_P_H0 + 1]
    h1 = p[:, :, _P_H1:_P_H1 + 1]
    w0 = p[:, :, _P_W0:_P_W0 + 1]
    w1 = p[:, :, _P_W1:_P_W1 + 1]
    val = p[:, :, _P_VAL:_P_VAL + 1]
    scale = p[:, :, _P_SCALE:_P_SCALE + 1]
    bias = p[:, :, _P_BIAS:_P_BIAS + 1]

    # --- add_gaussian_noise (per-image coin flip) + uint8 truncation ---------
    # Raw pixels are integers in [0, 255], so flag==0 => floor(clip(x)) == x.
    x = jnp.floor(jnp.clip(x + flag * noise_ref[...], 0.0, 255.0))

    # --- ToTensor (/255) + Normalize fused into one multiply-add -------------
    img = x * scale + bias

    # --- RandomErasing: constant fill inside [h0:h1, w0:w1] ------------------
    coords = coords_ref[...]                  # (2, HW) exact integer-valued f32
    hh = coords[0:1, :]                       # (1, HW) row index
    ww = coords[1:2, :]                       # (1, HW) col index
    mask = (hh >= h0) & (hh < h1) & (ww >= w0) & (ww < w1)   # (bb, C, HW)
    erased = jnp.where(mask, val, img)

    # --- torch.stack((img, img_erasing), dim=0), stored in final layout ------
    out_ref[:, 0] = img
    out_ref[:, 1] = erased


def preprocess(x, noise, flags, boxes, erase_vals, imgs_per_block=None):
    """x: (B, C, H, W) uint8 raw pixels.  noise: (B, C, H, W) f32 Gaussian noise.
    flags: (B,) {0,1} per-image noise coin flips.  boxes: (B, 4) int
    [h0, h1, w0, w1].  erase_vals: (B,) f32 fill values.
    Returns (B, 2, C, H, W) f32: stack of (normalized image, erased copy)."""
    b, c, h, w = x.shape
    hw = h * w
    # TODO(synk): pad HW up to a multiple of 128 for sizes like 300x300.
    assert hw % 128 == 0, "flattened image must be lane-dense"

    if imgs_per_block is None:
        # >= 2 grid steps so the ("parallel",) axis can shard over v7x's 2 TCs
        imgs_per_block = b // 2 if (b >= 2 and b % 2 == 0) else b
        # keep double-buffered per-step footprint (u8 in + f32 noise + 2x f32
        # out) comfortably inside VMEM on every generation (v7x: 64 MiB).
        def step_bytes(bb):
            return 2 * bb * c * hw * (1 + 4 + 2 * 4)
        while (imgs_per_block > 1 and imgs_per_block % 2 == 0
               and step_bytes(imgs_per_block) > 48 * 1024 * 1024):
            imgs_per_block //= 2
    assert b % imgs_per_block == 0
    bb = imgs_per_block

    scale = (1.0 / (255.0 * IMAGENET_STD)).astype(np.float32)        # (C,)
    bias = (-IMAGENET_MEAN / IMAGENET_STD).astype(np.float32)        # (C,)

    f32 = jnp.float32
    x2d = x.reshape(b, c, hw).astype(jnp.uint8)
    noise2d = noise.reshape(b, c, hw).astype(f32)

    params = jnp.concatenate([
        jnp.broadcast_to(flags.astype(f32)[:, None, None], (b, c, 1)),
        jnp.broadcast_to(boxes.astype(f32)[:, None, :], (b, c, 4)),
        jnp.broadcast_to(erase_vals.astype(f32)[:, None, None], (b, c, 1)),
        jnp.broadcast_to(jnp.asarray(scale)[None, :, None], (b, c, 1)),
        jnp.broadcast_to(jnp.asarray(bias)[None, :, None], (b, c, 1)),
    ], axis=-1)                                                       # (B,C,8)

    lin = jnp.arange(hw, dtype=jnp.int32)
    coords = jnp.stack([lin // w, lin % w], axis=0).astype(f32)       # (2,HW)

    grid_spec = pltpu.PrefetchScalarGridSpec(
        num_scalar_prefetch=0,
        grid=(b // bb,),
        in_specs=[
            pl.BlockSpec((bb, c, hw), lambda i: (i, 0, 0)),    # pixels (uint8)
            pl.BlockSpec((bb, c, hw), lambda i: (i, 0, 0)),    # noise (f32)
            pl.BlockSpec((2, hw), lambda i: (0, 0)),           # coords (const)
            pl.BlockSpec((bb, c, 8), lambda i: (i, 0, 0)),     # per-image params
        ],
        out_specs=pl.BlockSpec((bb, 2, c, hw), lambda i: (i, 0, 0, 0)),
    )

    out = pl.pallas_call(
        preprocess_kernel,
        out_shape=jax.ShapeDtypeStruct((b, 2, c, hw), jnp.float32),
        grid_spec=grid_spec,
        compiler_params=pltpu.CompilerParams(
            dimension_semantics=("parallel",)),
    )(x2d, noise2d, coords, params)

    # free metadata reshape only -- no transpose / extra HBM pass
    return out.reshape(b, 2, c, h, w)


if __name__ == "__main__":
    B, C, H, W = 2, 3, 16, 16
    key = jax.random.PRNGKey(0)
    k_img, k_noise, k_h0, k_hl, k_w0, k_wl, k_val = jax.random.split(key, 7)

    # raw uint8 "image" batch in 0..255
    x = jax.random.randint(k_img, (B, C, H, W), 0, 256,
                           dtype=jnp.int32).astype(jnp.uint8)
    # Gaussian noise, generated host-side so the result is fully reproducible
    noise = NOISE_STD * jax.random.normal(k_noise, (B, C, H, W),
                                          dtype=jnp.float32)
    # per-image "apply noise" coin flips (fixed so both branches are exercised)
    flags = jnp.array([0, 1], dtype=jnp.int32)
    # RandomErasing boxes and fill values
    h0 = jax.random.randint(k_h0, (B,), 0, H - 6)
    hl = jax.random.randint(k_hl, (B,), 2, 6)
    w0 = jax.random.randint(k_w0, (B,), 0, W - 6)
    wl = jax.random.randint(k_wl, (B,), 2, 6)
    boxes = jnp.stack([h0, h0 + hl, w0, w0 + wl], axis=1).astype(jnp.int32)
    erase_vals = jax.random.uniform(k_val, (B,)).astype(jnp.float32)

    out = preprocess(x, noise, flags, boxes, erase_vals)
    out = jax.block_until_ready(out)
    out_np = np.asarray(out)                                  # (B, 2, C, H, W)

    # ------------------------- numpy reference (float32) ---------------------
    scale = (1.0 / (255.0 * IMAGENET_STD)).astype(np.float32)
    bias = (-IMAGENET_MEAN / IMAGENET_STD).astype(np.float32)
    x_np = np.asarray(x).astype(np.float32)
    n_np = np.asarray(noise).astype(np.float32)
    f_np = np.asarray(flags).astype(np.float32).reshape(B, 1, 1, 1)
    noisy = np.floor(np.clip(x_np + f_np * n_np, 0.0, 255.0)).astype(np.float32)
    img = noisy * scale.reshape(1, C, 1, 1) + bias.reshape(1, C, 1, 1)

    boxes_np = np.asarray(boxes)
    vals_np = np.asarray(erase_vals)
    hh, ww = np.meshgrid(np.arange(H), np.arange(W), indexing="ij")
    mask = ((hh[None] >= boxes_np[:, 0, None, None])
            & (hh[None] < boxes_np[:, 1, None, None])
            & (ww[None] >= boxes_np[:, 2, None, None])
            & (ww[None] < boxes_np[:, 3, None, None]))[:, None]   # (B,1,H,W)
    erased = np.where(mask, vals_np.reshape(B, 1, 1, 1), img)
    expect = np.stack([img, erased], axis=1)                      # (B,2,C,H,W)

    np.testing.assert_allclose(out_np, expect, rtol=1e-5, atol=1e-5)

    # TODO(synk): file I/O (cv2.imread, labels txt), DataLoader /
    # ImbalancedDatasetSampler multinomial sampling, and geometric resampling
    # (ToPILImage / Resize / RandomCrop / CenterCrop / HorizontalFlip) have no
    # Pallas equivalent.
    print("KERNEL_OK")
</pallas_src>

<mosaic_0001>
module attributes {stable_mosaic.version = 11 : i64} {
  func.func @preprocess_kernel(%arg0: i32, %arg1: memref<1x3x256xi8, #tpu.memory_space<vmem>>, %arg2: memref<1x3x256xf32, #tpu.memory_space<vmem>>, %arg3: memref<2x256xf32, #tpu.memory_space<vmem>>, %arg4: memref<1x3x8xf32, #tpu.memory_space<vmem>>, %arg5: memref<1x2x3x256xf32, #tpu.memory_space<vmem>>) attributes {dimension_semantics = [#tpu.dimension_semantics<parallel>], iteration_bounds = array<i64: 2>, scalar_prefetch = 0 : i64, scratch_operands = 0 : i64, tpu.core_type = #tpu.core_type<tc>, window_params = [{transform_indices = @transform_0, window_bounds = array<i64: 1, 3, 256>}, {transform_indices = @transform_1, window_bounds = array<i64: 1, 3, 256>}, {pipeline_mode = #tpu.pipeline_mode<synchronous>, transform_indices = @transform_2, window_bounds = array<i64: 2, 256>}, {transform_indices = @transform_3, window_bounds = array<i64: 1, 3, 8>}, {transform_indices = @transform_4, window_bounds = array<i64: 1, 2, 3, 256>}]} {
    %c0 = arith.constant 0 : index
    %c0_0 = arith.constant 0 : index
    %c0_1 = arith.constant 0 : index
    %0 = vector.load %arg1[%c0, %c0_0, %c0_1] : memref<1x3x256xi8, #tpu.memory_space<vmem>>, vector<1x3x256xi8>
    %1 = arith.uitofp %0 : vector<1x3x256xi8> to vector<1x3x256xf32>
    %c0_2 = arith.constant 0 : index
    %c0_3 = arith.constant 0 : index
    %c0_4 = arith.constant 0 : index
    %2 = vector.load %arg4[%c0_2, %c0_3, %c0_4] : memref<1x3x8xf32, #tpu.memory_space<vmem>>, vector<1x3x8xf32>
    %3 = vector.extract_strided_slice %2 {offsets = [0, 0, 0], sizes = [1, 3, 1], strides = [1, 1, 1]} : vector<1x3x8xf32> to vector<1x3x1xf32>
    %4 = vector.extract_strided_slice %2 {offsets = [0, 0, 1], sizes = [1, 3, 1], strides = [1, 1, 1]} : vector<1x3x8xf32> to vector<1x3x1xf32>
    %5 = vector.extract_strided_slice %2 {offsets = [0, 0, 2], sizes = [1, 3, 1], strides = [1, 1, 1]} : vector<1x3x8xf32> to vector<1x3x1xf32>
    %6 = vector.extract_strided_slice %2 {offsets = [0, 0, 3], sizes = [1, 3, 1], strides = [1, 1, 1]} : vector<1x3x8xf32> to vector<1x3x1xf32>
    %7 = vector.extract_strided_slice %2 {offsets = [0, 0, 4], sizes = [1, 3, 1], strides = [1, 1, 1]} : vector<1x3x8xf32> to vector<1x3x1xf32>
    %8 = vector.extract_strided_slice %2 {offsets = [0, 0, 5], sizes = [1, 3, 1], strides = [1, 1, 1]} : vector<1x3x8xf32> to vector<1x3x1xf32>
    %9 = vector.extract_strided_slice %2 {offsets = [0, 0, 6], sizes = [1, 3, 1], strides = [1, 1, 1]} : vector<1x3x8xf32> to vector<1x3x1xf32>
    %10 = vector.extract_strided_slice %2 {offsets = [0, 0, 7], sizes = [1, 3, 1], strides = [1, 1, 1]} : vector<1x3x8xf32> to vector<1x3x1xf32>
    %c0_5 = arith.constant 0 : index
    %c0_6 = arith.constant 0 : index
    %c0_7 = arith.constant 0 : index
    %11 = vector.load %arg2[%c0_5, %c0_6, %c0_7] : memref<1x3x256xf32, #tpu.memory_space<vmem>>, vector<1x3x256xf32>
    %12 = vector.broadcast %3 : vector<1x3x1xf32> to vector<1x3x256xf32>
    %13 = arith.mulf %12, %11 : vector<1x3x256xf32>
    %14 = arith.addf %1, %13 : vector<1x3x256xf32>
    %cst = arith.constant 0.000000e+00 : f32
    %cst_8 = arith.constant 2.550000e+02 : f32
    %15 = vector.broadcast %cst : f32 to vector<1x3x256xf32>
    %16 = arith.maximumf %15, %14 : vector<1x3x256xf32>
    %17 = vector.broadcast %cst_8 : f32 to vector<1x3x256xf32>
    %18 = arith.minimumf %17, %16 : vector<1x3x256xf32>
    %19 = math.floor %18 : vector<1x3x256xf32>
    %20 = vector.broadcast %9 : vector<1x3x1xf32> to vector<1x3x256xf32>
    %21 = arith.mulf %19, %20 : vector<1x3x256xf32>
    %22 = vector.broadcast %10 : vector<1x3x1xf32> to vector<1x3x256xf32>
    %23 = arith.addf %21, %22 : vector<1x3x256xf32>
    %c0_9 = arith.constant 0 : index
    %c0_10 = arith.constant 0 : index
    %24 = vector.load %arg3[%c0_9, %c0_10] : memref<2x256xf32, #tpu.memory_space<vmem>>, vector<2x256xf32>
    %25 = vector.extract_strided_slice %24 {offsets = [0, 0], sizes = [1, 256], strides = [1, 1]} : vector<2x256xf32> to vector<1x256xf32>
    %26 = vector.extract_strided_slice %24 {offsets = [1, 0], sizes = [1, 256], strides = [1, 1]} : vector<2x256xf32> to vector<1x256xf32>
    %27 = vector.shape_cast %25 : vector<1x256xf32> to vector<1x1x256xf32>
    %28 = vector.broadcast %27 : vector<1x1x256xf32> to vector<1x3x256xf32>
    %29 = vector.broadcast %4 : vector<1x3x1xf32> to vector<1x3x256xf32>
    %30 = arith.cmpf oge, %28, %29 : vector<1x3x256xf32>
    %31 = vector.shape_cast %25 : vector<1x256xf32> to vector<1x1x256xf32>
    %32 = vector.broadcast %31 : vector<1x1x256xf32> to vector<1x3x256xf32>
    %33 = vector.broadcast %5 : vector<1x3x1xf32> to vector<1x3x256xf32>
    %34 = arith.cmpf olt, %32, %33 : vector<1x3x256xf32>
    %35 = arith.andi %30, %34 : vector<1x3x256xi1>
    %36 = vector.shape_cast %26 : vector<1x256xf32> to vector<1x1x256xf32>
    %37 = vector.broadcast %36 : vector<1x1x256xf32> to vector<1x3x256xf32>
    %38 = vector.broadcast %6 : vector<1x3x1xf32> to vector<1x3x256xf32>
    %39 = arith.cmpf oge, %37, %38 : vector<1x3x256xf32>
    %40 = arith.andi %35, %39 : vector<1x3x256xi1>
    %41 = vector.shape_cast %26 : vector<1x256xf32> to vector<1x1x256xf32>
    %42 = vector.broadcast %41 : vector<1x1x256xf32> to vector<1x3x256xf32>
    %43 = vector.broadcast %7 : vector<1x3x1xf32> to vector<1x3x256xf32>
    %44 = arith.cmpf olt, %42, %43 : vector<1x3x256xf32>
    %45 = arith.andi %40, %44 : vector<1x3x256xi1>
    %46 = vector.shape_cast %8 : vector<1x3x1xf32> to vector<1x3x1xf32>
    %47 = vector.broadcast %46 : vector<1x3x1xf32> to vector<1x3x256xf32>
    %48 = arith.select %45, %47, %23 : vector<1x3x256xi1>, vector<1x3x256xf32>
    %c0_11 = arith.constant 0 : index
    %c0_12 = arith.constant 0 : index
    %c0_13 = arith.constant 0 : index
    %c0_14 = arith.constant 0 : index
    %49 = vector.load %arg5[%c0_11, %c0_12, %c0_13, %c0_14] : memref<1x2x3x256xf32, #tpu.memory_space<vmem>>, vector<1x1x3x256xf32>
    %50 = vector.shape_cast %49 : vector<1x1x3x256xf32> to vector<1x3x256xf32>
    %51 = vector.shape_cast %23 : vector<1x3x256xf32> to vector<1x1x3x256xf32>
    tpu.vector_store %arg5[%c0_11, %c0_12, %c0_13, %c0_14], %51 {strides = array<i32>} : memref<1x2x3x256xf32, #tpu.memory_space<vmem>>, vector<1x1x3x256xf32>,
    %c0_15 = arith.constant 0 : index
    %c1 = arith.constant 1 : index
    %c0_16 = arith.constant 0 : index
    %c0_17 = arith.constant 0 : index
    %52 = vector.load %arg5[%c0_15, %c1, %c0_16, %c0_17] : memref<1x2x3x256xf32, #tpu.memory_space<vmem>>, vector<1x1x3x256xf32>
    %53 = vector.shape_cast %52 : vector<1x1x3x256xf32> to vector<1x3x256xf32>
    %54 = vector.shape_cast %48 : vector<1x3x256xf32> to vector<1x1x3x256xf32>
    tpu.vector_store %arg5[%c0_15, %c1, %c0_16, %c0_17], %54 {strides = array<i32>} : memref<1x2x3x256xf32, #tpu.memory_space<vmem>>, vector<1x1x3x256xf32>,
    return
  }
  func.func @transform_0(%arg0: i32) -> (i32, i32, i32) {
    %c0_i32 = arith.constant 0 : i32
    %c0_i32_0 = arith.constant 0 : i32
    %c0_i32_1 = arith.constant 0 : i32
    return %arg0, %c0_i32, %c0_i32_0 : i32, i32, i32
  }
  func.func @transform_1(%arg0: i32) -> (i32, i32, i32) {
    %c0_i32 = arith.constant 0 : i32
    %c0_i32_0 = arith.constant 0 : i32
    %c0_i32_1 = arith.constant 0 : i32
    return %arg0, %c0_i32, %c0_i32_0 : i32, i32, i32
  }
  func.func @transform_2(%arg0: i32) -> (i32, i32) {
    %c0_i32 = arith.constant 0 : i32
    %c0_i32_0 = arith.constant 0 : i32
    %c0_i32_1 = arith.constant 0 : i32
    return %c0_i32, %c0_i32_0 : i32, i32
  }
  func.func @transform_3(%arg0: i32) -> (i32, i32, i32) {
    %c0_i32 = arith.constant 0 : i32
    %c0_i32_0 = arith.constant 0 : i32
    %c0_i32_1 = arith.constant 0 : i32
    return %arg0, %c0_i32, %c0_i32_0 : i32, i32, i32
  }
  func.func @transform_4(%arg0: i32) -> (i32, i32, i32, i32) {
    %c0_i32 = arith.constant 0 : i32
    %c0_i32_0 = arith.constant 0 : i32
    %c0_i32_1 = arith.constant 0 : i32
    %c0_i32_2 = arith.constant 0 : i32
    return %arg0, %c0_i32, %c0_i32_0, %c0_i32_1 : i32, i32, i32, i32
  }
}

</mosaic_0001>

<bundles_post_ra>
// kernel: tpu_custom_call.1
= control target key start
LH: loop header
LB: loop body
LE: loop exit
PB: predicated region body
PF: predicated region fallthrough
CT: control target
= control target key end

     0   :  { %s528_s15 = smov 0   ;;  %s560_s0 = inlined_call_operand.vmem [shape: u8[2,3,256], index: 0, kind: input, shape index: {}]   ;;  %s561_s1 = inlined_call_operand.vmem [shape: f32[2,3,256], index: 1, kind: input, shape index: {}]   ;;  %s562_s2 = inlined_call_operand.vmem [shape: f32[2,256], index: 2, kind: input, shape index: {}]   ;;  %s563_s3 = inlined_call_operand.vmem [shape: f32[2,3,8], index: 3, kind: input, shape index: {}]   ;;  %s564_s4 = inlined_call_operand.vmem [shape: f32[2,2,3,256], index: 4, kind: output, shape index: {}]  }
   0x1 LB: > { %s443_s16 = sadd.s32 4294967295, %s492_s15   ;;  %p447_p0 = scmp.ge.s32.totalorder %s492_s15, 1  ;;  %s492_s15 = sphi %s528_s15, %s14_s15  }
   0x2   : > { %p180_p1 = scmp.lt.s32.totalorder %s492_s15, 3 }
   0x4   : > { %p181_p2 = pnand %p447_p0, %p180_p1 }
   0x5   : > { %p214_p3 = scmp.lt.s32.totalorder (!%p181_p2), %s443_s16, 1  ;;  %v494_v0 = vmov (!%p181_p2), 7   ;;  %v495_v1 = vmov (!%p181_p2), 0   ;;  %v496_v3 = vmov (!%p181_p2), 1   ;;  %v497_v4 = vmov (!%p181_p2), 6  }
   0x6   : > { %184 = sbr.rel (%p181_p2) target bundleno = 169 (0xa9), region = 36  ;;  %478 = vset.pattern.permute.xlu1 (!%p181_p2), %v494_v0  ;;  %476 = vset.pattern.permute.xlu0 (!%p181_p2), %v495_v1  ;;  %v498_v5 = vmov (!%p181_p2), 2   ;;  %v499_v6 = vmov (!%p181_p2), 3   ;;  %v500_v7 = vmov (!%p181_p2), 4   ;;  %v501_v8 = vmov (!%p181_p2), 5  }
   0x7   : > { %v262_v10 = vlaneseq (!%p181_p2)  ;;  %v502_v16 = vmov (!%p181_p2), 839922192   ;;  %v280_v24 = vld [vmem:[%s562_s2] sm:$0xf] (!%p181_p2) }
   0x8   : > { %v260_v17 = vunpack.c.l.s4 (!%p181_p2), %v502_v16 }
   0x9   : > { %v263_v13 = vshrl.u32 (!%p181_p2), %v262_v10, 7 }
   0xa   : > { %v261_v27 = vunpack.c.0.s8 (!%p181_p2), %v260_v17 }
   0xb   : > { %v284_v23 = vsub.s32 (!%p181_p2), 0, %v263_v13  ;;  %v288_v25 = vsub.s32 (!%p181_p2), 2, %v263_v13  ;;  %v316_v26 = vsub.s32 (!%p181_p2), 1, %v263_v13  ;;  %v320_v29 = vsub.s32 (!%p181_p2), 3, %v263_v13 }
   0xc   : > { %v264_v36 = vsub.s32 (!%p181_p2), %v261_v27, %v263_v13 }
   0xd   : > { %s566_s16 = smov (!%p214_p3, %s443_s16), 1  ;;  %v285_v31 = vrot.slane %v280_v24, %v284_v23  ;;  %v289_v34 = vrot.slane %v280_v24, %v288_v25  ;;  %v317_v35 = vrot.slane %v280_v24, %v316_v26  ;;  %v321_v38 = vrot.slane %v280_v24, %v320_v29 }
   0xe   : > { %s451_s17 = sshll.u32 %s566_s16, 2  ;;  %s448_s21 = sshll.u32 %s566_s16, 1 }
   0xf   : > { %s226_s20 = scalar_lea.vmem %s563_s3, %s451_s17  ;;  %s217_s24 = scalar_lea.vmem %s560_s0, %s448_s21  ;;  %v295_v39 = vrot.slane %v285_v31, %v284_v23  ;;  %v299_v42 = vrot.slane %v289_v34, %v284_v23  ;;  %v327_v44 = vrot.slane %v317_v35, %v316_v26  ;;  %v331_v46 = vrot.slane %v321_v38, %v316_v26 }
  0x10   : > { %v236_v2 = vld [vmem:[%s226_s20] sm:$0x7]  ;;  %s457_s25 = sshll.u32 %s566_s16, 3  ;;  %s458_s5 = sshll.u32 %s566_s16, 4 }
  0x11   : > { %269 = vperm.xlu1 %478, %v236_v2   ;;  %240 = vperm.xlu0 %476, %v236_v2   ;;  %v232_v9 = vld [vmem:[%s217_s24] sm:$0x3]  ;;  %s222_s28 = scalar_lea.vmem %s561_s1, %s457_s25  ;;  %s231_s8 = scalar_lea.vmem %s564_s4, %s458_s5 }
  0x12   : > { %v233_v11 = vunpack.c.0.s8 %v232_v9  ;;  %v237_v12 = vld [vmem:[%s222_s28] sm:$0x77] }
  0x13   : > { %v244_v15 = vcombine.high %v237_v12, %v237_v12 }
  0x14   : > { %v234_v14 = vand.u32 255, %v233_v11 }
  0x15   : > { %479 = vset.pattern.permute.xlu1 %v496_v3  ;;  %477 = vset.pattern.permute.xlu0 %v497_v4 }
  0x16   : > { %301 = vperm.xlu1 %479, %v236_v2   ;;  %257 = vperm.xlu0 %477, %v236_v2   ;;  %v235_v20 = vcvt.s32.f32 %v234_v14 }
  0x1a   : > { %480 = vset.pattern.permute.xlu1 %v498_v5  ;;  %481 = vset.pattern.permute.xlu0 %v499_v6 }
  0x1b   : > { %307 = vperm.xlu1 %480, %v236_v2   ;;  %333 = vperm.xlu0 %481, %v236_v2  }
  0x1f   : > { %482 = vset.pattern.permute.xlu1 %v500_v7  ;;  %484 = vset.pattern.permute.xlu0 %v501_v8 }
  0x20   : > { %341 = vperm.xlu1 %482, %v236_v2  }
  0x24   : > { %483 = vset.pattern.permute.xlu1 %v501_v8 }
  0x25   : > { %349 = vperm.xlu1 %483, %v236_v2  }
  0x90   : > { %v270_v18 = vpop.permute.xlu1 %269  ;;  %v241_v19 = vpop.permute.xlu0 %240 }
  0x91   : > { %v246_v21 = vmul.f32 %v241_v19, %v237_v12  ;;  %v247_v22 = vmul.f32 %v244_v15, %v241_v19  ;;  %v277_v48 = vrot.slane %v270_v18, %v264_v36 }
  0x93   : > { %v250_v28 = vcombine.low %v246_v21, %v247_v22 }
  0x95   : > { %v252_v30 = vadd.f32 %v250_v28, %v235_v20  ;;  %v302_v32 = vpop.permute.xlu1 %301  ;;  %v258_v33 = vpop.permute.xlu0 %257 }
  0x96   : > { %v265_v41 = vrot.slane %v258_v33, %v264_v36  ;;  %vm304_vm2 = vcmp.ge.f32.partialorder %v295_v39, %v302_v32  ;;  %vm305_vm3 = vcmp.ge.f32.partialorder %v299_v42, %v302_v32 }
  0x97   : > { %v253_v37 = vmax.f32 %v252_v30, 0.0 }
  0x99   : > { %v254_v40 = vmin.f32 %v253_v37, 255.0 }
  0x9a   : > { %v308_v43 = vpop.permute.xlu1 %307  ;;  %v334_v47 = vpop.permute.xlu0 %333 }
  0x9b   : > { %v255_v45 = vfloor.f32 %v254_v40  ;;  %vm310_vm0 = vcmp.lt.f32.partialorder %v295_v39, %v308_v43  ;;  %vm311_vm1 = vcmp.lt.f32.partialorder %v299_v42, %v308_v43  ;;  %vm336_vm5 = vcmp.ge.f32.partialorder %v327_v44, %v334_v47 }
  0x9c   : > { %vm312_vm4 = vmand %vm304_vm2, %vm310_vm0  ;;  %vm337_vm7 = vcmp.ge.f32.partialorder %v331_v46, %v334_v47 }
  0x9d   : > { %v267_v49 = vmul.f32 %v265_v41, %v255_v45  ;;  %vm313_vm6 = vmand %vm305_vm3, %vm311_vm1 }
  0x9e   : > { %vm338_vm9 = vmand %vm312_vm4, %vm336_vm5 }
  0x9f   : > { %v279_v50 = vadd.f32 %v277_v48, %v267_v49  ;;  %v342_v51 = vpop.permute.xlu1 %341  ;;  %vm339_vm11 = vmand %vm313_vm6, %vm337_vm7 }
  0xa0   : > { %vm344_vm8 = vcmp.lt.f32.partialorder %v327_v44, %v342_v51  ;;  %vm345_vm10 = vcmp.lt.f32.partialorder %v331_v46, %v342_v51 }
  0xa1   : > { %357 = vst [vmem:[%s231_s8] sm:$0x77] %v279_v50  ;;  %vm346_vm12 = vmand %vm338_vm9, %vm344_vm8  ;;  %v353_v52 = vcombine.high %v279_v50, %v279_v50 }
  0xa2   : > { %vm347_vm13 = vmand %vm339_vm11, %vm345_vm10 }
  0xa4   : > { %v350_v53 = vpop.permute.xlu1 %349 }
  0xa5   : > { %v355_v54 = vsel %vm346_vm12, %v350_v53, %v279_v50  ;;  %v356_v55 = vsel %vm347_vm13, %v350_v53, %v353_v52 }
  0xa6   : > { %v360_v56 = vcombine.low %v355_v54, %v356_v55 }
  0xa8   : > { %454 = vst [vmem:[%s231_s8 + $0x8] sm:$0x77] %v360_v56 }
  0xa9 PF: > { %s14_s15 = sadd.s32 1, %s492_s15  }
  0xaa   : > { %p11_p4 = scmp.ge.s32.totalorder %s14_s15, 4  }
  0xac   :  { %13 = sbr.rel (!%p11_p4) target bundleno = 1 (0x1), region = 73 }

</bundles_post_ra>
